<compile_context>
chip_gen: v7x
topology: tpu7x:2x2x1
jax: 0.10.0
libtpu: 0.0.40
codegen_flags: <defaults>
</compile_context>

<pallas_src>
import math

import jax
import jax.numpy as jnp
from jax.experimental import pallas as pl
from jax.experimental.pallas import tpu as pltpu

F32 = jnp.float32
GROUP = 8  # pixels packed per matmul row -> output block is GROUP*16 = 128 lanes


# ----------------------------------------------------------------------------
# Pallas kernel: fused (deconv1 + ReLU + deconv2 + ReLU) as two dense matmuls
# ----------------------------------------------------------------------------
def _fused_decoder_kernel(x_ref, w1_ref, b1_ref, w2_ref, b2_ref, o_ref):
    # x_ref : [TM, G*Cin]      (G pixels per row, Cin values per pixel)
    # w1_ref: [G*Cin, G*D1]    block-diagonal packed ConvTranspose #1
    # w2_ref: [G*D1, G*D2]     block-diagonal packed ConvTranspose #2
    # o_ref : [TM, G*D2]       (G*D2 == 128 -> lane-dense, unmasked stores)
    h = jnp.dot(x_ref[...], w1_ref[...], preferred_element_type=jnp.float32)
    h = jnp.maximum(h + b1_ref[...], 0.0)
    y = jnp.dot(h, w2_ref[...], preferred_element_type=jnp.float32)
    o_ref[...] = jnp.maximum(y + b2_ref[...], 0.0)


# ----------------------------------------------------------------------------
# One-time parameter packing (hoisted out of the forward hot path)
# ----------------------------------------------------------------------------
def prepare_decoder_params(params, group=GROUP):
    """Pack the two ConvTranspose2d(k=2, s=2) layers into the per-pixel MLP
    weights, then block-diagonalize for `group` pixels per matmul row."""
    w1, b1 = params["w1"], params["b1"]      # [Cin, C1, 2, 2], [C1]
    w2, b2 = params["w2"], params["b2"]      # [C1, C2, 2, 2], [C2]
    Cin, C1, KH, KW = w1.shape
    C2 = w2.shape[1]
    D1 = KH * KW * C1                        # hidden width per pixel (= 64)
    PH, PW = 2 * KH, 2 * KW                  # final 4x4 patch per input pixel
    D2 = PH * PW * C2                        # output width per pixel (= 16)

    # Layer 1: h[(a*KW+b)*C1 + co] = relu(sum_ci x[ci] * w1[ci, co, a, b] + b1[co])
    w1r = jnp.transpose(w1, (0, 2, 3, 1)).reshape(Cin, D1)        # [Cin, D1]
    b1r = jnp.tile(b1, KH * KW)                                   # [D1]

    # Layer 2 fused: out[p*PW+q] = relu(sum_{a,b,co} h[..] * w2[co, :, p-2a, q-2b] + b2)
    w2e = jnp.transpose(w2, (0, 2, 3, 1))                          # [C1, 2, 2, C2]
    blocks = []
    for a in range(KH):
        for b in range(KW):
            blk = jnp.zeros((C1, PH, PW, C2), dtype=w2.dtype)
            blk = blk.at[:, 2 * a:2 * a + 2, 2 * b:2 * b + 2, :].set(w2e)
            blocks.append(blk)
    w2big = jnp.stack(blocks, axis=0).reshape(KH * KW * C1, D2)    # [D1, D2]
    b2r = jnp.tile(b2, PH * PW)                                    # [D2]

    # Block-diagonalize so each matmul row carries `group` independent pixels.
    eye = jnp.eye(group, dtype=F32)
    return dict(
        w1g=jnp.kron(eye, w1r.astype(F32)),            # [G*Cin, G*D1]
        b1g=jnp.tile(b1r.astype(F32), group)[None, :],  # [1, G*D1]
        w2g=jnp.kron(eye, w2big.astype(F32)),           # [G*D1, G*D2]
        b2g=jnp.tile(b2r.astype(F32), group)[None, :],  # [1, G*D2]
    )


# ----------------------------------------------------------------------------
# Forward
# ----------------------------------------------------------------------------
def _block_rows(rows: int) -> int:
    """Rows of the grouped pixel matrix per grid step: multiple of 8, capped
    for VMEM, and (when possible) >= 2 grid steps for megacore parallelism."""
    if rows <= 8:
        return 8
    half = ((rows + 1) // 2 + 7) // 8 * 8
    return max(8, min(512, half))


def can_decoder_forward(x_nchw, prep):
    """x_nchw: [N, 4, H, W] -> [N, 1, 4H, 4W] (matches CanDecoder.forward)."""
    w1g, b1g, w2g, b2g = prep["w1g"], prep["b1g"], prep["w2g"], prep["b2g"]
    G = GROUP
    N, Cin, H, W = x_nchw.shape
    GCin, GD1 = w1g.shape
    GD2 = w2g.shape[1]
    assert GCin == G * Cin, (GCin, G, Cin)
    D2 = GD2 // G
    PH = PW = 4                   # both layers double the spatial size
    C2 = D2 // (PH * PW)

    # Flatten to the per-pixel matrix [P, Cin] (NCHW -> NHWC -> rows).
    xf = jnp.transpose(x_nchw.astype(F32), (0, 2, 3, 1)).reshape(-1, Cin)
    P = xf.shape[0]
    rows = -(-P // G)
    tm = _block_rows(rows)
    rows_pad = -(-rows // tm) * tm
    P_pad = rows_pad * G
    if P_pad != P:
        xf = jnp.pad(xf, ((0, P_pad - P), (0, 0)))      # padded pixels sliced off below
    xg = xf.reshape(rows_pad, G * Cin)                  # 8 pixels per row

    grid = (rows_pad // tm,)
    y = pl.pallas_call(
        _fused_decoder_kernel,
        out_shape=jax.ShapeDtypeStruct((rows_pad, GD2), F32),
        grid=grid,
        in_specs=[
            pl.BlockSpec((tm, G * Cin), lambda i: (i, 0)),
            pl.BlockSpec((GCin, GD1), lambda i: (0, 0)),   # weights stay resident
            pl.BlockSpec((1, GD1), lambda i: (0, 0)),
            pl.BlockSpec((GD1, GD2), lambda i: (0, 0)),
            pl.BlockSpec((1, GD2), lambda i: (0, 0)),
        ],
        out_specs=pl.BlockSpec((tm, GD2), lambda i: (i, 0)),
        compiler_params=pltpu.CompilerParams(
            dimension_semantics=("parallel",)),
    )(xg, w1g, b1g, w2g, b2g)

    # Depth-to-space: each input pixel produced a PH x PW x C2 patch.
    y = y.reshape(P_pad, D2)[:P]
    y = y.reshape(N, H, W, PH, PW, C2)
    y = jnp.transpose(y, (0, 5, 1, 3, 2, 4)).reshape(N, C2, PH * H, PW * W)
    return y


# ----------------------------------------------------------------------------
# Parameter init (PyTorch-style uniform) and pure-JAX reference
# ----------------------------------------------------------------------------
def init_can_decoder_params(key):
    def conv_t(kw, kb, cin, cout, k):
        bound = 1.0 / math.sqrt(cin * k * k)
        w = jax.random.uniform(kw, (cin, cout, k, k), F32, -bound, bound)
        b = jax.random.uniform(kb, (cout,), F32, -bound, bound)
        return w, b

    k1, k2, k3, k4 = jax.random.split(key, 4)
    w1, b1 = conv_t(k1, k2, 4, 16, 2)
    w2, b2 = conv_t(k3, k4, 16, 1, 2)
    return dict(w1=w1, b1=b1, w2=w2, b2=b2)


def _conv_transpose_2x2_s2_ref(x, w, b):
    # out[n, d, 2h+a, 2w+b] = sum_c x[n,c,h,w] * w[c,d,a,b] + bias[d]
    y = jnp.einsum("nchw,cdab->ndhawb", x, w)
    N, D, H, _, W, _ = y.shape
    return y.reshape(N, D, 2 * H, 2 * W) + b[None, :, None, None]


def can_decoder_forward_ref(x, params):
    h = jnp.maximum(
        _conv_transpose_2x2_s2_ref(x.astype(F32), params["w1"], params["b1"]), 0.0)
    y = jnp.maximum(
        _conv_transpose_2x2_s2_ref(h, params["w2"], params["b2"]), 0.0)
    return y


# ----------------------------------------------------------------------------
if __name__ == "__main__":
    key = jax.random.PRNGKey(0)
    kp, kx = jax.random.split(key)

    N, C_in, H, W = 2, 4, 16, 16
    params = init_can_decoder_params(kp)
    x = jax.random.normal(kx, (N, C_in, H, W), F32)

    prep = prepare_decoder_params(params)          # one-time weight packing
    fwd = jax.jit(can_decoder_forward)

    y = jax.block_until_ready(fwd(x, prep))
    assert y.shape == (N, 1, 4 * H, 4 * W), y.shape

    y_ref = jax.block_until_ready(can_decoder_forward_ref(x, params))
    max_err = float(jnp.max(jnp.abs(y - y_ref)))
    assert jnp.allclose(y, y_ref, rtol=1e-4, atol=1e-4), max_err

    print("KERNEL_OK")
</pallas_src>

<mosaic_0001>
module attributes {stable_mosaic.version = 11 : i64} {
  func.func @_fused_decoder_kernel(%arg0: i32, %arg1: memref<32x32xf32, #tpu.memory_space<vmem>>, %arg2: memref<32x512xf32, #tpu.memory_space<vmem>>, %arg3: memref<1x512xf32, #tpu.memory_space<vmem>>, %arg4: memref<512x128xf32, #tpu.memory_space<vmem>>, %arg5: memref<1x128xf32, #tpu.memory_space<vmem>>, %arg6: memref<32x128xf32, #tpu.memory_space<vmem>>) attributes {dimension_semantics = [#tpu.dimension_semantics<parallel>], iteration_bounds = array<i64: 2>, scalar_prefetch = 0 : i64, scratch_operands = 0 : i64, tpu.core_type = #tpu.core_type<tc>, window_params = [{transform_indices = @transform_0, window_bounds = array<i64: 32, 32>}, {pipeline_mode = #tpu.pipeline_mode<synchronous>, transform_indices = @transform_1, window_bounds = array<i64: 32, 512>}, {pipeline_mode = #tpu.pipeline_mode<synchronous>, transform_indices = @transform_2, window_bounds = array<i64: 1, 512>}, {pipeline_mode = #tpu.pipeline_mode<synchronous>, transform_indices = @transform_3, window_bounds = array<i64: 512, 128>}, {pipeline_mode = #tpu.pipeline_mode<synchronous>, transform_indices = @transform_4, window_bounds = array<i64: 1, 128>}, {transform_indices = @transform_5, window_bounds = array<i64: 32, 128>}]} {
    %c0 = arith.constant 0 : index
    %c0_0 = arith.constant 0 : index
    %0 = vector.load %arg1[%c0, %c0_0] : memref<32x32xf32, #tpu.memory_space<vmem>>, vector<32x32xf32>
    %c0_1 = arith.constant 0 : index
    %c0_2 = arith.constant 0 : index
    %1 = vector.load %arg2[%c0_1, %c0_2] : memref<32x512xf32, #tpu.memory_space<vmem>>, vector<32x512xf32>
    %cst = arith.constant dense<0.000000e+00> : vector<32x512xf32>
    %2 = tpu.matmul %0, %1, %cst {dimension_numbers = #tpu.dot_dimension_numbers<[1], [0], [0], [1], [0, 0, 1, 1], [], []>} : vector<32x32xf32>, vector<32x512xf32>, vector<32x512xf32> -> vector<32x512xf32>
    %c0_3 = arith.constant 0 : index
    %c0_4 = arith.constant 0 : index
    %3 = vector.load %arg3[%c0_3, %c0_4] : memref<1x512xf32, #tpu.memory_space<vmem>>, vector<1x512xf32>
    %4 = vector.broadcast %3 : vector<1x512xf32> to vector<32x512xf32>
    %5 = arith.addf %2, %4 : vector<32x512xf32>
    %cst_5 = arith.constant 0.000000e+00 : f32
    %6 = vector.broadcast %cst_5 : f32 to vector<32x512xf32>
    %7 = arith.maximumf %5, %6 : vector<32x512xf32>
    %c0_6 = arith.constant 0 : index
    %c0_7 = arith.constant 0 : index
    %8 = vector.load %arg4[%c0_6, %c0_7] : memref<512x128xf32, #tpu.memory_space<vmem>>, vector<512x128xf32>
    %cst_8 = arith.constant dense<0.000000e+00> : vector<32x128xf32>
    %9 = tpu.matmul %7, %8, %cst_8 {dimension_numbers = #tpu.dot_dimension_numbers<[1], [0], [0], [1], [0, 0, 1, 1], [], []>} : vector<32x512xf32>, vector<512x128xf32>, vector<32x128xf32> -> vector<32x128xf32>
    %c0_9 = arith.constant 0 : index
    %c0_10 = arith.constant 0 : index
    %10 = vector.load %arg5[%c0_9, %c0_10] : memref<1x128xf32, #tpu.memory_space<vmem>>, vector<1x128xf32>
    %11 = vector.broadcast %10 : vector<1x128xf32> to vector<32x128xf32>
    %12 = arith.addf %9, %11 : vector<32x128xf32>
    %cst_11 = arith.constant 0.000000e+00 : f32
    %13 = vector.broadcast %cst_11 : f32 to vector<32x128xf32>
    %14 = arith.maximumf %12, %13 : vector<32x128xf32>
    %c0_12 = arith.constant 0 : index
    %c0_13 = arith.constant 0 : index
    %15 = vector.load %arg6[%c0_12, %c0_13] : memref<32x128xf32, #tpu.memory_space<vmem>>, vector<32x128xf32>
    tpu.vector_store %arg6[%c0_12, %c0_13], %14 {strides = array<i32>} : memref<32x128xf32, #tpu.memory_space<vmem>>, vector<32x128xf32>,
    return
  }
  func.func @transform_0(%arg0: i32) -> (i32, i32) {
    %c0_i32 = arith.constant 0 : i32
    %c0_i32_0 = arith.constant 0 : i32
    return %arg0, %c0_i32 : i32, i32
  }
  func.func @transform_1(%arg0: i32) -> (i32, i32) {
    %c0_i32 = arith.constant 0 : i32
    %c0_i32_0 = arith.constant 0 : i32
    %c0_i32_1 = arith.constant 0 : i32
    return %c0_i32, %c0_i32_0 : i32, i32
  }
  func.func @transform_2(%arg0: i32) -> (i32, i32) {
    %c0_i32 = arith.constant 0 : i32
    %c0_i32_0 = arith.constant 0 : i32
    %c0_i32_1 = arith.constant 0 : i32
    return %c0_i32, %c0_i32_0 : i32, i32
  }
  func.func @transform_3(%arg0: i32) -> (i32, i32) {
    %c0_i32 = arith.constant 0 : i32
    %c0_i32_0 = arith.constant 0 : i32
    %c0_i32_1 = arith.constant 0 : i32
    return %c0_i32, %c0_i32_0 : i32, i32
  }
  func.func @transform_4(%arg0: i32) -> (i32, i32) {
    %c0_i32 = arith.constant 0 : i32
    %c0_i32_0 = arith.constant 0 : i32
    %c0_i32_1 = arith.constant 0 : i32
    return %c0_i32, %c0_i32_0 : i32, i32
  }
  func.func @transform_5(%arg0: i32) -> (i32, i32) {
    %c0_i32 = arith.constant 0 : i32
    %c0_i32_0 = arith.constant 0 : i32
    return %arg0, %c0_i32 : i32, i32
  }
}

</mosaic_0001>

<bundles_post_ra>
// kernel: can_decoder_forward.1
= control target key start
LH: loop header
LB: loop body
LE: loop exit
PB: predicated region body
PF: predicated region fallthrough
CT: control target
= control target key end

     0   :  { %s1018_s18 = smov 0   ;;  %s1310_s0 = inlined_call_operand.vmem [shape: f32[64,32], index: 0, kind: input, shape index: {}]   ;;  %s1311_s1 = inlined_call_operand.vmem [shape: f32[32,512], index: 1, kind: input, shape index: {}]   ;;  %s1312_s2 = inlined_call_operand.vmem [shape: f32[1,512], index: 2, kind: input, shape index: {}]   ;;  %s1313_s3 = inlined_call_operand.vmem [shape: f32[512,128], index: 3, kind: input, shape index: {}]   ;;  %s1314_s4 = inlined_call_operand.vmem [shape: f32[1,128], index: 4, kind: input, shape index: {}]   ;;  %s1315_s5 = inlined_call_operand.vmem [shape: f32[64,128], index: 5, kind: output, shape index: {}]  }
   0x1 LB: > { %s782_s19 = sadd.s32 4294967295, %s985_s18   ;;  %p786_p0 = scmp.ge.s32.totalorder %s985_s18, 1  ;;  %s985_s18 = sphi %s1018_s18, %s15_s18  }
   0x2   : > { %p188_p1 = scmp.lt.s32.totalorder %s985_s18, 3 }
   0x4   : > { %p189_p2 = pnand %p786_p0, %p188_p1 }
   0x5   : > { %v233_v0 = vld [vmem:[%s1311_s1 + $0x8] sm:$0xff] (!%p189_p2)  ;;  %v235_v2 = vld [vmem:[%s1311_s1 + $0x18] sm:$0xff] (!%p189_p2)  ;;  %s787_s26 = sshll.u32 (!%p189_p2), %s782_s19, 2  ;;  %v232_v5 = vld [vmem:[%s1311_s1] sm:$0xff] (!%p189_p2)  ;;  %v987_v7 = vmov (!%p189_p2), 0.0   ;;  %vm270_vm0 = vcmask (!%p189_p2), 261120  }
   0x6   : > { %192 = sbr.rel (%p189_p2) target bundleno = 469 (0x1d5), region = 40  ;;  %v237_v1 = vld [vmem:[%s1311_s1 + $0x28] sm:$0xff] (!%p189_p2)  ;;  %v239_v4 = vld [vmem:[%s1311_s1 + $0x38] sm:$0xff] (!%p189_p2)  ;;  %v236_v6 = vld [vmem:[%s1311_s1 + $0x20] sm:$0xff] (!%p189_p2)  ;;  %347 = vmatprep.mubr.f32.mxu0 (!%p189_p2), %v987_v7  ;;  %436 = vmatprep.mubr.f32.mxu1 (!%p189_p2), %v987_v7  ;;  %p217_p3 = scmp.lt.s32.totalorder (!%p189_p2), %s787_s26, 7 }
   0x7   : > { %v890_v3 = vpack.c.bf16 (!%p189_p2), %v237_v1, %v233_v0  ;;  %v898_v8 = vpack.c.bf16 (!%p189_p2), %v239_v4, %v235_v2  ;;  %v892_v9 = vpack.c.bf16 (!%p189_p2), %v236_v6, %v232_v5  ;;  %v234_v10 = vld [vmem:[%s1311_s1 + $0x10] sm:$0xff] (!%p189_p2)  ;;  %v241_v12 = vld [vmem:[%s1311_s1 + $0x48] sm:$0xff] (!%p189_p2)  ;;  %v243_v15 = vld [vmem:[%s1311_s1 + $0x58] sm:$0xff] (!%p189_p2) }
   0x8   : > { %v238_v11 = vld [vmem:[%s1311_s1 + $0x30] sm:$0xff] (!%p189_p2)  ;;  %v245_v14 = vld [vmem:[%s1311_s1 + $0x68] sm:$0xff] (!%p189_p2)  ;;  %v247_v16 = vld [vmem:[%s1311_s1 + $0x78] sm:$0xff] (!%p189_p2) }
   0x9   : > { %891 = vmatprep.subr.bf16.mxu0 (!%p189_p2), %v890_v3  ;;  %v900_v13 = vpack.c.bf16 (!%p189_p2), %v238_v11, %v234_v10  ;;  %899 = vmatprep.subr.bf16.mxu1 (!%p189_p2), %v898_v8  ;;  %v894_v17 = vpack.c.bf16 (!%p189_p2), %v245_v14, %v241_v12  ;;  %v902_v18 = vpack.c.bf16 (!%p189_p2), %v247_v16, %v243_v15  ;;  %v240_v19 = vld [vmem:[%s1311_s1 + $0x40] sm:$0xff] (!%p189_p2)  ;;  %v242_v21 = vld [vmem:[%s1311_s1 + $0x50] sm:$0xff] (!%p189_p2)  ;;  %v494_v25 = vld [vmem:[%s1313_s3 + $0x88] sm:$0xff] (!%p189_p2) }
   0xa   : > { %893 = vmatpush1.bf16.msra.mxu0 (!%p189_p2), %v892_v9  ;;  %v244_v20 = vld [vmem:[%s1311_s1 + $0x60] sm:$0xff] (!%p189_p2)  ;;  %v246_v23 = vld [vmem:[%s1311_s1 + $0x70] sm:$0xff] (!%p189_p2)  ;;  %v526_v29 = vld [vmem:[%s1313_s3 + $0x188] sm:$0xff] (!%p189_p2) }
   0xb   : > { %901 = vmatpush1.bf16.msra.mxu1 (!%p189_p2), %v900_v13  ;;  %v896_v22 = vpack.c.bf16 (!%p189_p2), %v244_v20, %v240_v19  ;;  %v493_v24 = vld [vmem:[%s1313_s3 + $0x80] sm:$0xff] (!%p189_p2)  ;;  %895 = vmatprep.subr.bf16.mxu0 (!%p189_p2), %v894_v17  ;;  %v904_v26 = vpack.c.bf16 (!%p189_p2), %v246_v23, %v242_v21  ;;  %v478_v33 = vld [vmem:[%s1313_s3 + $0x8] sm:$0xff] (!%p189_p2)  ;;  %v495_v37 = vld [vmem:[%s1313_s3 + $0x90] sm:$0xff] (!%p189_p2) }
   0xc   : > { %903 = vmatprep.subr.bf16.mxu1 (!%p189_p2), %v902_v18  ;;  %v906_v27 = vpack.c.bf16 (!%p189_p2), %v494_v25, %v493_v24  ;;  %v525_v28 = vld [vmem:[%s1313_s3 + $0x180] sm:$0xff] (!%p189_p2)  ;;  %v510_v36 = vld [vmem:[%s1313_s3 + $0x108] sm:$0xff] (!%p189_p2)  ;;  %v496_v38 = vld [vmem:[%s1313_s3 + $0x98] sm:$0xff] (!%p189_p2) }
   0xd   : > { %s1317_s26 = smov (!%p217_p3, %s787_s26), 7  ;;  %v477_v30 = vld [vmem:[%s1313_s3] sm:$0xff]  ;;  %v938_v31 = vpack.c.bf16 %v526_v29, %v525_v28  ;;  %v910_v41 = vpack.c.bf16 %v496_v38, %v495_v37  ;;  %v527_v42 = vld [vmem:[%s1313_s3 + $0x190] sm:$0xff]  ;;  %v528_v43 = vld [vmem:[%s1313_s3 + $0x198] sm:$0xff] }
   0xe   : > { %s788_s30 = sshll.u32 %s1317_s26, 3  ;;  %897 = vmatpush1.bf16.msra.mxu0 %v896_v22  ;;  %v509_v34 = vld [vmem:[%s1313_s3 + $0x100] sm:$0xff]  ;;  %v908_v35 = vpack.c.bf16 %v478_v33, %v477_v30  ;;  %v479_v44 = vld [vmem:[%s1313_s3 + $0x10] sm:$0xff]  ;;  %v942_v45 = vpack.c.bf16 %v528_v43, %v527_v42  ;;  %v480_v46 = vld [vmem:[%s1313_s3 + $0x18] sm:$0xff] }
   0xf   : > { %s1090_s12 = scalar_lea.vmem %s1310_s0, %s788_s30  ;;  %905 = vmatpush1.bf16.msra.mxu1 %v904_v26  ;;  %907 = vmatprep.subr.bf16.mxu0 %v906_v27  ;;  %v940_v40 = vpack.c.bf16 %v510_v36, %v509_v34  ;;  %v511_v47 = vld [vmem:[%s1313_s3 + $0x110] sm:$0xff]  ;;  %v512_v48 = vld [vmem:[%s1313_s3 + $0x118] sm:$0xff]  ;;  %v497_v49 = vld [vmem:[%s1313_s3 + $0xa0] sm:$0xff]  ;;  %v912_v52 = vpack.c.bf16 %v480_v46, %v479_v44  ;;  %s226_s14 = scalar_lea.vmem %s1315_s5, %s788_s30 }
  0x10   : > { %v228_v32 = vld [vmem:[%s1090_s12] sm:$0xff]  ;;  %v229_v39 = vld [vmem:[%s1090_s12 + $0x8] sm:$0xff]  ;;  %939 = vmatprep.subr.bf16.mxu1 %v938_v31  ;;  %v944_v54 = vpack.c.bf16 %v512_v48, %v511_v47  ;;  %v499_v61 = vld [vmem:[%s1313_s3 + $0xb0] sm:$0xff] }
  0x11   : > { %791 = vmatmul.mubr.msk.f32.vlgmr.msra.gmra.mrb[0].mxu0 %vm270_vm0, %v228_v32  ;;  %v498_v50 = vld [vmem:[%s1313_s3 + $0xa8] sm:$0xff]  ;;  %v529_v51 = vld [vmem:[%s1313_s3 + $0x1a0] sm:$0xff]  ;;  %v500_v62 = vld [vmem:[%s1313_s3 + $0xb8] sm:$0xff] }
  0x12   : > { %795 = vmatmul.mubr.msk.f32.vlgmr.msra.gmra.mrb[0].mxu1 %vm270_vm0, %v228_v32  ;;  %353 = vmatprep.mubr.f32.mxu0 %v987_v7  ;;  %v530_v53 = vld [vmem:[%s1313_s3 + $0x1a8] sm:$0xff]  ;;  %v914_v55 = vpack.c.bf16 %v498_v50, %v497_v49  ;;  %v481_v56 = vld [vmem:[%s1313_s3 + $0x20] sm:$0xff]  ;;  %v230_v63 = vld [vmem:[%s1090_s12 + $0x10] sm:$0xff]  ;;  %v918_v4 = vpack.c.bf16 %v500_v62, %v499_v61  ;;  %v250_v61 = vlaneseq }
  0x13   : > { %442 = vmatprep.mubr.f32.mxu1 %v987_v7  ;;  %909 = vmatpush3.bf16.msra.mxu0 %v908_v35  ;;  %v482_v57 = vld [vmem:[%s1313_s3 + $0x28] sm:$0xff]  ;;  %v513_v58 = vld [vmem:[%s1313_s3 + $0x120] sm:$0xff]  ;;  %v946_v59 = vpack.c.bf16 %v530_v53, %v529_v51  ;;  %v531_v0 = vld [vmem:[%s1313_s3 + $0x1b0] sm:$0xff] }
  0x14   : > { %941 = vmatpush3.bf16.msra.mxu1 %v940_v40  ;;  %911 = vmatprep.subr.bf16.mxu0 %v910_v41  ;;  %v514_v60 = vld [vmem:[%s1313_s3 + $0x128] sm:$0xff]  ;;  %v532_v1 = vld [vmem:[%s1313_s3 + $0x1b8] sm:$0xff]  ;;  %v916_v2 = vpack.c.bf16 %v482_v57, %v481_v56  ;;  %v483_v5 = vld [vmem:[%s1313_s3 + $0x30] sm:$0xff]  ;;  %v251_v62 = vshrl.u32 %v250_v61, 7 }
  0x15   : > { %792 = vmatmul.mubr.msk.f32.gmra.mrb[2].mxu0 %vm270_vm0, %v229_v39  ;;  %943 = vmatprep.subr.bf16.mxu1 %v942_v45  ;;  %v948_v3 = vpack.c.bf16 %v514_v60, %v513_v58  ;;  %v484_v6 = vld [vmem:[%s1313_s3 + $0x38] sm:$0xff]  ;;  %v515_v8 = vld [vmem:[%s1313_s3 + $0x130] sm:$0xff]  ;;  %v950_v9 = vpack.c.bf16 %v532_v1, %v531_v0  ;;  %v501_v11 = vld [vmem:[%s1313_s3 + $0xc0] sm:$0xff] }
  0x16   : > { %796 = vmatmul.mubr.msk.f32.gmra.mrb[2].mxu1 %vm270_vm0, %v229_v39  ;;  %359 = vmatprep.mubr.f32.mxu0 %v987_v7  ;;  %v516_v10 = vld [vmem:[%s1313_s3 + $0x138] sm:$0xff]  ;;  %v502_v12 = vld [vmem:[%s1313_s3 + $0xc8] sm:$0xff]  ;;  %v533_v14 = vld [vmem:[%s1313_s3 + $0x1c0] sm:$0xff]  ;;  %v920_v16 = vpack.c.bf16 %v484_v6, %v483_v5  ;;  %v260_v1 = vsub.s32 2, %v251_v62 }
  0x17   : > { %448 = vmatprep.mubr.f32.mxu1 %v987_v7  ;;  %913 = vmatpush3.bf16.msra.mxu0 %v912_v52  ;;  %v231_v13 = vld [vmem:[%s1090_s12 + $0x18] sm:$0xff]  ;;  %v534_v15 = vld [vmem:[%s1313_s3 + $0x1c8] sm:$0xff]  ;;  %v952_v17 = vpack.c.bf16 %v516_v10, %v515_v8  ;;  %v922_v18 = vpack.c.bf16 %v502_v12, %v501_v11  ;;  %v485_v19 = vld [vmem:[%s1313_s3 + $0x40] sm:$0xff] }
  0x18   : > { %945 = vmatpush3.bf16.msra.mxu1 %v944_v54  ;;  %915 = vmatprep.subr.bf16.mxu0 %v914_v55  ;;  %v486_v20 = vld [vmem:[%s1313_s3 + $0x48] sm:$0xff]  ;;  %v517_v21 = vld [vmem:[%s1313_s3 + $0x140] sm:$0xff]  ;;  %v503_v23 = vld [vmem:[%s1313_s3 + $0xd0] sm:$0xff] }
  0x19   : > { %793 = vmatmul.mubr.msk.f32.gmra.mrb[4].mxu0 %vm270_vm0, %v230_v63  ;;  %947 = vmatprep.subr.bf16.mxu1 %v946_v59  ;;  %v518_v22 = vld [vmem:[%s1313_s3 + $0x148] sm:$0xff]  ;;  %v504_v24 = vld [vmem:[%s1313_s3 + $0xd8] sm:$0xff]  ;;  %v535_v25 = vld [vmem:[%s1313_s3 + $0x1d0] sm:$0xff]  ;;  %v924_v27 = vpack.c.bf16 %v486_v20, %v485_v19 }
  0x1a   : > { %797 = vmatmul.mubr.msk.f32.gmra.mrb[4].mxu1 %vm270_vm0, %v230_v63  ;;  %365 = vmatprep.mubr.f32.mxu0 %v987_v7  ;;  %v536_v26 = vld [vmem:[%s1313_s3 + $0x1d8] sm:$0xff]  ;;  %v956_v28 = vpack.c.bf16 %v518_v22, %v517_v21  ;;  %v926_v29 = vpack.c.bf16 %v504_v24, %v503_v23  ;;  %v487_v30 = vld [vmem:[%s1313_s3 + $0x50] sm:$0xff]  ;;  %v505_v35 = vld [vmem:[%s1313_s3 + $0xe0] sm:$0xff]  ;;  %v252_v63 = vsub.s32 0, %v251_v62 }
  0x1b   : > { %454 = vmatprep.mubr.f32.mxu1 %v987_v7  ;;  %917 = vmatpush3.bf16.msra.mxu0 %v916_v2  ;;  %v954_v7 = vpack.c.bf16 %v534_v15, %v533_v14  ;;  %v488_v31 = vld [vmem:[%s1313_s3 + $0x58] sm:$0xff]  ;;  %v519_v32 = vld [vmem:[%s1313_s3 + $0x150] sm:$0xff]  ;;  %v958_v33 = vpack.c.bf16 %v536_v26, %v535_v25  ;;  %v506_v36 = vld [vmem:[%s1313_s3 + $0xe8] sm:$0xff]  ;;  %v256_v2 = vsub.s32 1, %v251_v62 }
  0x1c   : > { %949 = vmatpush3.bf16.msra.mxu1 %v948_v3  ;;  %919 = vmatprep.subr.bf16.mxu0 %v918_v4  ;;  %v520_v34 = vld [vmem:[%s1313_s3 + $0x158] sm:$0xff]  ;;  %v537_v37 = vld [vmem:[%s1313_s3 + $0x1e0] sm:$0xff]  ;;  %v538_v38 = vld [vmem:[%s1313_s3 + $0x1e8] sm:$0xff]  ;;  %v928_v39 = vpack.c.bf16 %v488_v31, %v487_v30  ;;  %v930_v41 = vpack.c.bf16 %v506_v36, %v505_v35  ;;  %v264_v3 = vsub.s32 3, %v251_v62 }
  0x1d   : > { %794 = vmatmul.mubr.msk.f32.gmra.mrb[6].mxu0 %vm270_vm0, %v231_v13  ;;  %951 = vmatprep.subr.bf16.mxu1 %v950_v9  ;;  %v960_v40 = vpack.c.bf16 %v520_v34, %v519_v32  ;;  %v962_v42 = vpack.c.bf16 %v538_v38, %v537_v37  ;;  %v489_v43 = vld [vmem:[%s1313_s3 + $0x60] sm:$0xff]  ;;  %v490_v44 = vld [vmem:[%s1313_s3 + $0x68] sm:$0xff]  ;;  %v507_v49 = vld [vmem:[%s1313_s3 + $0xf0] sm:$0xff] }
  0x1e   : > { %798 = vmatmul.mubr.msk.f32.gmra.mrb[6].mxu1 %vm270_vm0, %v231_v13  ;;  %v521_v45 = vld [vmem:[%s1313_s3 + $0x160] sm:$0xff]  ;;  %v932_v46 = vpack.c.bf16 %v490_v44, %v489_v43  ;;  %v522_v47 = vld [vmem:[%s1313_s3 + $0x168] sm:$0xff]  ;;  %v508_v50 = vld [vmem:[%s1313_s3 + $0xf8] sm:$0xff] }
  0x1f   : > { %921 = vmatpush3.bf16.msra.mxu0 %v920_v16  ;;  %v964_v48 = vpack.c.bf16 %v522_v47, %v521_v45  ;;  %v539_v51 = vld [vmem:[%s1313_s3 + $0x1f0] sm:$0xff]  ;;  %v934_v52 = vpack.c.bf16 %v508_v50, %v507_v49  ;;  %v540_v53 = vld [vmem:[%s1313_s3 + $0x1f8] sm:$0xff]  ;;  %v248_v0 = vld [vmem:[%s1312_s2] sm:$0xf] }
  0x20   : > { %953 = vmatpush3.bf16.msra.mxu1 %v952_v17  ;;  %923 = vmatprep.subr.bf16.mxu0 %v922_v18  ;;  %v491_v54 = vld [vmem:[%s1313_s3 + $0x70] sm:$0xff]  ;;  %v492_v55 = vld [vmem:[%s1313_s3 + $0x78] sm:$0xff]  ;;  %v966_v56 = vpack.c.bf16 %v540_v53, %v539_v51  ;;  %v253_v4 = vrot.slane %v248_v0, %v252_v63  ;;  %v261_v5 = vrot.slane %v248_v0, %v260_v1 }
  0x21   : > { %955 = vmatprep.subr.bf16.mxu1 %v954_v7  ;;  %v936_v57 = vpack.c.bf16 %v492_v55, %v491_v54  ;;  %v523_v58 = vld [vmem:[%s1313_s3 + $0x170] sm:$0xff]  ;;  %v524_v59 = vld [vmem:[%s1313_s3 + $0x178] sm:$0xff]  ;;  %v257_v6 = vrot.slane %v248_v0, %v256_v2  ;;  %v265_v8 = vrot.slane %v248_v0, %v264_v3 }
  0x22   : > { %v968_v60 = vpack.c.bf16 %v524_v59, %v523_v58  ;;  %v799_v58 = vld [vmem:[%s1314_s4] ss:$0 sm:$0xff] }
  0x23   : > { %925 = vmatpush3.bf16.msra.mxu0 %v924_v27 }
  0x24   : > { %957 = vmatpush3.bf16.msra.mxu1 %v956_v28  ;;  %927 = vmatprep.subr.bf16.mxu0 %v926_v29 }
  0x25   : > { %959 = vmatprep.subr.bf16.mxu1 %v958_v33 }
  0x27   : > { %929 = vmatpush3.bf16.msra.mxu0 %v928_v39 }
  0x28   : > { %961 = vmatpush3.bf16.msra.mxu1 %v960_v40  ;;  %931 = vmatprep.subr.bf16.mxu0 %v930_v41 }
  0x29   : > { %963 = vmatprep.subr.bf16.mxu1 %v962_v42 }
  0x2b   : > { %933 = vmatpush3.bf16.msra.mxu0 %v932_v46 }
  0x2c   : > { %965 = vmatpush3.bf16.msra.mxu1 %v964_v48  ;;  %935 = vmatprep.subr.bf16.mxu0 %v934_v52 }
  0x2d   : > { %967 = vmatprep.subr.bf16.mxu1 %v966_v56 }
  0x2f   : > { %937 = vmatpush3.bf16.msra.mxu0 %v936_v57 }
  0x30   : > { %969 = vmatpush3.bf16.msra.mxu1 %v968_v60 }
  0xe4   : > { %v349_v9 = vpop.f32.mrb[0].mxu0 }
  0xe5   : > { %v350_v10 = vadd.f32 %v349_v9, %v253_v4  ;;  %v438_v11 = vpop.f32.mrb[0].mxu1  ;;  %v351_v12 = vpop.f32.mrb[1].mxu0 }
  0xe6   : > { %v439_v13 = vadd.f32 %v438_v11, %v261_v5  ;;  %v352_v14 = vadd.f32 %v351_v12, %v257_v6  ;;  %v440_v15 = vpop.f32.mrb[1].mxu1 }
  0xe7   : > { %v441_v16 = vadd.f32 %v440_v15, %v265_v8  ;;  %v461_v20 = vmax.f32 %v350_v10, 0.0 }
  0xe8   : > { %v463_v17 = vmax.f32 %v439_v13, 0.0  ;;  %v462_v18 = vmax.f32 %v352_v14, 0.0  ;;  %v355_v19 = vpop.f32.mrb[2].mxu0 }
  0xe9   : > { %v464_v21 = vmax.f32 %v441_v16, 0.0  ;;  %v356_v7 = vadd.f32 %v355_v19, %v253_v4  ;;  %v444_v22 = vpop.f32.mrb[2].mxu1  ;;  %v357_v23 = vpop.f32.mrb[3].mxu0 }
  0xea   : > { %v445_v24 = vadd.f32 %v444_v22, %v261_v5  ;;  %v358_v25 = vadd.f32 %v357_v23, %v257_v6  ;;  %v446_v26 = vpop.f32.mrb[3].mxu1  ;;  %612 = vmatprep.mubr.f32.mxu0 %v462_v18 }
  0xeb   : > { %v447_v27 = vadd.f32 %v446_v26, %v265_v8  ;;  %697 = vmatprep.mubr.f32.mxu1 %v464_v21  ;;  %613 = vmatmul.mubr.f32.vlgmr.msra.gmra.mrb[8].mxu0 %v461_v20  ;;  %v465_v31 = vmax.f32 %v356_v7, 0.0 }
  0xec   : > { %v467_v28 = vmax.f32 %v445_v24, 0.0  ;;  %v466_v29 = vmax.f32 %v358_v25, 0.0  ;;  %698 = vmatmul.mubr.f32.vlgmr.msra.gmra.mrb[8].mxu1 %v463_v17  ;;  %v361_v30 = vpop.f32.mrb[4].mxu0 }
  0xed   : > { %v468_v32 = vmax.f32 %v447_v27, 0.0  ;;  %v362_v33 = vadd.f32 %v361_v30, %v253_v4  ;;  %v450_v34 = vpop.f32.mrb[4].mxu1  ;;  %v363_v35 = vpop.f32.mrb[5].mxu0 }
  0xee   : > { %v451_v36 = vadd.f32 %v450_v34, %v261_v5  ;;  %v364_v37 = vadd.f32 %v363_v35, %v257_v6  ;;  %v452_v38 = vpop.f32.mrb[5].mxu1  ;;  %617 = vmatprep.mubr.f32.mxu0 %v466_v29 }
  0xef   : > { %v453_v39 = vadd.f32 %v452_v38, %v265_v8  ;;  %702 = vmatprep.mubr.f32.mxu1 %v468_v32  ;;  %618 = vmatmul.mubr.f32.gmra.mrb[10].mxu0 %v465_v31  ;;  %v469_v43 = vmax.f32 %v362_v33, 0.0 }
  0xf0   : > { %v471_v40 = vmax.f32 %v451_v36, 0.0  ;;  %v470_v41 = vmax.f32 %v364_v37, 0.0  ;;  %703 = vmatmul.mubr.f32.gmra.mrb[10].mxu1 %v467_v28  ;;  %v367_v42 = vpop.f32.mrb[6].mxu0 }
  0xf1   : > { %v472_v44 = vmax.f32 %v453_v39, 0.0  ;;  %v368_v45 = vadd.f32 %v367_v42, %v253_v4  ;;  %v456_v46 = vpop.f32.mrb[6].mxu1  ;;  %v369_v47 = vpop.f32.mrb[7].mxu0 }
  0xf2   : > { %v457_v48 = vadd.f32 %v456_v46, %v261_v5  ;;  %v370_v49 = vadd.f32 %v369_v47, %v257_v6  ;;  %v458_v50 = vpop.f32.mrb[7].mxu1  ;;  %622 = vmatprep.mubr.f32.mxu0 %v470_v41 }
  0xf3   : > { %v459_v51 = vadd.f32 %v458_v50, %v265_v8  ;;  %707 = vmatprep.mubr.f32.mxu1 %v472_v44  ;;  %623 = vmatmul.mubr.f32.gmra.mrb[12].mxu0 %v469_v43  ;;  %v473_v54 = vmax.f32 %v368_v45, 0.0 }
  0xf4   : > { %v475_v52 = vmax.f32 %v457_v48, 0.0  ;;  %v474_v53 = vmax.f32 %v370_v49, 0.0  ;;  %708 = vmatmul.mubr.f32.gmra.mrb[12].mxu1 %v471_v40 }
  0xf5   : > { %v476_v55 = vmax.f32 %v459_v51, 0.0 }
  0xf6   : > { %627 = vmatprep.mubr.f32.mxu0 %v474_v53 }
  0xf7   : > { %712 = vmatprep.mubr.f32.mxu1 %v476_v55  ;;  %628 = vmatmul.mubr.f32.gmra.mrb[14].mxu0 %v473_v54 }
  0xf8   : > { %713 = vmatmul.mubr.f32.gmra.mrb[14].mxu1 %v475_v52 }
 0x1be   : > { %v834_v56 = vpop.f32.mrb[8].mxu0 }
 0x1bf   : > { %v878_v57 = vpop.f32.mrb[8].mxu1  ;;  %v835_v59 = vpop.f32.mrb[9].mxu0 }
 0x1c0   : > { %v836_v60 = vadd.f32 %v835_v59, %v834_v56  ;;  %v879_v61 = vpop.f32.mrb[9].mxu1 }
 0x1c1   : > { %v880_v62 = vadd.f32 %v879_v61, %v878_v57 }
 0x1c2   : > { %v615_v63 = vadd.f32 %v836_v60, %v799_v58  ;;  %v837_v0 = vpop.f32.mrb[10].mxu0 }
 0x1c3   : > { %v881_v1 = vpop.f32.mrb[10].mxu1  ;;  %v838_v2 = vpop.f32.mrb[11].mxu0 }
 0x1c4   : > { %v700_v3 = vadd.f32 %v880_v62, %v615_v63  ;;  %v839_v4 = vadd.f32 %v838_v2, %v837_v0  ;;  %v882_v5 = vpop.f32.mrb[11].mxu1 }
 0x1c5   : > { %v883_v6 = vadd.f32 %v882_v5, %v881_v1 }
 0x1c6   : > { %v718_v8 = vmax.f32 %v700_v3, 0.0  ;;  %v620_v9 = vadd.f32 %v839_v4, %v799_v58  ;;  %v840_v10 = vpop.f32.mrb[12].mxu0 }
 0x1c7   : > { %v884_v11 = vpop.f32.mrb[12].mxu1  ;;  %v841_v12 = vpop.f32.mrb[13].mxu0 }
 0x1c8   : > { %722 = vst [vmem:[%s226_s14] sm:$0xff] %v718_v8  ;;  %v705_v13 = vadd.f32 %v883_v6, %v620_v9  ;;  %v842_v14 = vadd.f32 %v841_v12, %v840_v10  ;;  %v885_v15 = vpop.f32.mrb[13].mxu1 }
 0x1c9   : > { %v886_v16 = vadd.f32 %v885_v15, %v884_v11 }
 0x1ca   : > { %v719_v17 = vmax.f32 %v705_v13, 0.0  ;;  %v625_v18 = vadd.f32 %v842_v14, %v799_v58  ;;  %v843_v19 = vpop.f32.mrb[14].mxu0 }
 0x1cb   : > { %v887_v20 = vpop.f32.mrb[14].mxu1  ;;  %v844_v21 = vpop.f32.mrb[15].mxu0 }
 0x1cc   : > { %723 = vst [vmem:[%s226_s14 + $0x8] sm:$0xff] %v719_v17  ;;  %v710_v7 = vadd.f32 %v886_v16, %v625_v18  ;;  %v845_v22 = vadd.f32 %v844_v21, %v843_v19  ;;  %v888_v23 = vpop.f32.mrb[15].mxu1 }
 0x1cd   : > { %v889_v24 = vadd.f32 %v888_v23, %v887_v20 }
 0x1ce   : > { %v720_v25 = vmax.f32 %v710_v7, 0.0  ;;  %v630_v26 = vadd.f32 %v845_v22, %v799_v58 }
 0x1d0   : > { %724 = vst [vmem:[%s226_s14 + $0x10] sm:$0xff] %v720_v25  ;;  %v715_v27 = vadd.f32 %v889_v24, %v630_v26 }
 0x1d2   : > { %v721_v28 = vmax.f32 %v715_v27, 0.0 }
 0x1d4   : > { %725 = vst [vmem:[%s226_s14 + $0x18] sm:$0xff] %v721_v28 }
 0x1d5 PF: > { %s15_s18 = sadd.s32 1, %s985_s18  }
 0x1d6   : > { %p12_p4 = scmp.ge.s32.totalorder %s15_s18, 4  }
 0x1d8   :  { %14 = sbr.rel (!%p12_p4) target bundleno = 1 (0x1), region = 70 }

</bundles_post_ra>
